<compile_context>
chip_gen: v5e
topology: v5e:2x2
jax: 0.10.0
libtpu: 0.0.40
codegen_flags: <defaults>
</compile_context>

<pallas_src>
import functools
import math

import jax
import jax.numpy as jnp
from jax.experimental import pallas as pl
from jax.experimental.pallas import tpu as pltpu


_TILE_V_MAX = 1024                      # lanes per vocab grid block (mult of 128)
_TARGET_TILE_BYTES = 8 * 1024 * 1024    # per pipelined buffer (x2 double-buffer)
_MIN_TILE_BYTES = 2 * 1024 * 1024       # floor when splitting for megacore
_CHUNK_ELEMS = 16 * 1024                # elements per in-kernel row chunk


def _cdiv(a, b):
    return -(-a // b)


def _round_up(x, n):
    return _cdiv(x, n) * n


def _choose_tiles(b, rows, v, itemsize):
    """Pick (tile_m, tile_v, r_chunk) for the streamed preds blocks.

    tile_v : whole vocab if it fits the lane cap, else a multiple-of-128 chunk
             streamed on the extra innermost "arbitrary" grid axis.
    tile_m : as many rows as fit an ~8 MiB per-buffer VMEM budget (counting
             the 128-lane padding of both the preds and the target blocks),
             capped so the two "parallel" grid axes still expose >=4 programs
             when possible (v7x dual TC), never below ~2 MiB per tile.
    r_chunk: rows per inner fori_loop step; keeps every [r_chunk, tile_v] f32
             temporary around vreg size instead of full-tile VMEM spills.
    """
    sub = 8 if itemsize >= 4 else (16 if itemsize == 2 else 32)

    tile_v = v if v <= _TILE_V_MAX else _TILE_V_MAX
    lanes_padded = _round_up(tile_v, 128)

    # per-row VMEM bytes of one pipelined buffer: preds row + padded tgt row
    row_bytes = lanes_padded * itemsize + 128 * 4

    tile_m = max(sub, (_TARGET_TILE_BYTES // row_bytes) // sub * sub)
    rows_rounded = _round_up(rows, sub)
    tile_m = min(tile_m, rows_rounded)

    # v7x dual-TC megacore: try to expose >= 4 parallel programs, but never
    # shrink a tile below ~2 MiB (per-grid-step overhead amortization).
    if b * _cdiv(rows_rounded, tile_m) < 4 and tile_m > sub:
        min_rows = max(sub, (_MIN_TILE_BYTES // row_bytes) // sub * sub)
        per_tile = _round_up(_cdiv(rows_rounded, _cdiv(4, b)), sub)
        tile_m = min(tile_m, max(min_rows, per_tile))

    r_chunk = max(sub, (_CHUNK_ELEMS // lanes_padded) // sub * sub)
    r_chunk = min(r_chunk, tile_m)
    return tile_m, tile_v, r_chunk


def _kl_smooth_kernel(preds_ref, tgt_ref, out_ref, *, tile_v, num_v_tiles,
                      v_total, r_chunk, n_full, rem_rows,
                      w_other, w_target, c_const):
    """One (batch, row-tile, vocab-tile) grid step.

    preds_ref: [1, TILE_M, TILE_V]  log-probs block (native dtype; bf16 ok)
    tgt_ref  : [1, TILE_M, 1]       int32 target ids; -1 => masked/padded row
    out_ref  : [1, 1, 8, 128]       f32 partial sum, accumulated across the
                                    innermost ("arbitrary") vocab grid axis.

    Boundary row tiles may read past M in preds and boundary vocab tiles past
    V; those regions hold unspecified data and are discarded with selects
    (tid == -1 / col >= V), so NaN/Inf garbage cannot propagate.
    """
    vi = pl.program_id(2)
    mask_lanes = (num_v_tiles > 1) and (v_total % tile_v != 0)

    # (1, V) iota; broadcasting against tid [rows, 1] does the row expansion,
    # so no full [rows, V] int32 temporary is ever built.
    col = jax.lax.broadcasted_iota(jnp.int32, (1, tile_v), 1)
    if num_v_tiles > 1:
        col = col + vi * tile_v

    def chunk(r0, rows):
        # widen per chunk only (stays ~vreg-resident, no full-tile f32 copy)
        p = preds_ref[0, pl.ds(r0, rows), :].astype(jnp.float32)   # [rows, TV]
        tid = tgt_ref[0, pl.ds(r0, rows), :]                       # [rows, 1]
        keep = tid >= 0
        # w_j = alpha/V + (1-alpha) * onehot_j(target)
        w = jnp.where(col == tid, jnp.float32(w_target), jnp.float32(w_other))
        pw = p * w
        if mask_lanes:
            # lanes beyond the real vocab (boundary vocab tile) are garbage
            pw = jnp.where(col < v_total, pw, jnp.float32(0.0))
        row_dot = jnp.sum(pw, axis=1, keepdims=True)               # [rows, 1]
        dot = jnp.sum(jnp.where(keep, row_dot, jnp.float32(0.0)))
        kept = jnp.sum(jnp.where(keep, jnp.float32(1.0), jnp.float32(0.0)))
        return dot, kept

    if n_full == 1 and rem_rows == 0:
        dot_sum, kept = chunk(0, r_chunk)
    else:
        def body(c, carry):
            dot_acc, kept_acc = carry
            r0 = pl.multiple_of(c * r_chunk, 8)
            d, k = chunk(r0, r_chunk)
            return dot_acc + d, kept_acc + k

        dot_sum, kept = jax.lax.fori_loop(
            0, n_full, body, (jnp.float32(0.0), jnp.float32(0.0)))
        if rem_rows:
            d, k = chunk(n_full * r_chunk, rem_rows)
            dot_sum, kept = dot_sum + d, kept + k

    # per kept row the contribution is  C - sum_j w_j * p_j ; the constant
    # part (kept * C) is added exactly once, on the first vocab tile.
    delta = jnp.where(vi == 0, kept * jnp.float32(c_const),
                      jnp.float32(0.0)) - dot_sum

    @pl.when(vi == 0)
    def _init():
        out_ref[...] = jnp.zeros_like(out_ref)

    # lane-dense (8,128) output block with the partial sum at [0, 0]
    rs = jax.lax.broadcasted_iota(jnp.int32, (8, 128), 0)
    ls = jax.lax.broadcasted_iota(jnp.int32, (8, 128), 1)
    blk = jnp.where((rs == 0) & (ls == 0), delta, jnp.float32(0.0))
    out_ref[...] += blk[None, None]


def loss_forward(preds, target, mask, *, voc_size, alpha=0.1):
    """JAX/Pallas equivalent of Loss.forward(preds, target, mask)."""
    b, m, v = preds.shape
    assert v == voc_size
    assert m >= 2

    # ---- tiny [B, M] glue (mirrors the PyTorch forward's slicing) ----
    mask_s = mask[:, :m][:, 1:]                            # [B, M-1] True = pad
    target_s = target[:, :m][:, 1:].astype(jnp.int32)      # [B, M-1]
    tgt_enc = jnp.where(mask_s, jnp.int32(-1), target_s)   # -1 marks dropped row

    rows = m - 1
    itemsize = preds.dtype.itemsize
    tile_m, tile_v, r_chunk = _choose_tiles(b, rows, v, itemsize)
    num_m_tiles = _cdiv(rows, tile_m)
    num_v_tiles = _cdiv(v, tile_v)
    m_pad = num_m_tiles * tile_m

    tgt_enc = jnp.pad(tgt_enc, ((0, 0), (0, m_pad - rows)), constant_values=-1)
    tgt_enc = tgt_enc[:, :, None]                           # [B, M_pad, 1]

    # ---- compile-time constants of the collapsed KL ----
    w_other = alpha / voc_size
    w_target = w_other + (1.0 - alpha)
    c_const = 0.0
    if w_target > 0.0:
        c_const += w_target * math.log(w_target)
    if w_other > 0.0:
        c_const += (voc_size - 1) * w_other * math.log(w_other)

    n_full = tile_m // r_chunk
    rem_rows = tile_m - n_full * r_chunk

    kernel = functools.partial(
        _kl_smooth_kernel,
        tile_v=tile_v, num_v_tiles=num_v_tiles, v_total=v,
        r_chunk=r_chunk, n_full=n_full, rem_rows=rem_rows,
        w_other=float(w_other), w_target=float(w_target),
        c_const=float(c_const))

    partials = pl.pallas_call(
        kernel,
        out_shape=jax.ShapeDtypeStruct((b, num_m_tiles, 8, 128), jnp.float32),
        grid=(b, num_m_tiles, num_v_tiles),
        in_specs=[
            # preds streamed directly in its original [B, M, V] layout;
            # garbage rows/lanes from boundary blocks are masked in-kernel.
            pl.BlockSpec((1, tile_m, tile_v), lambda bi, ti, vi: (bi, ti, vi)),
            pl.BlockSpec((1, tile_m, 1), lambda bi, ti, vi: (bi, ti, 0)),
        ],
        out_specs=pl.BlockSpec((1, 1, 8, 128), lambda bi, ti, vi: (bi, ti, 0, 0)),
        compiler_params=pltpu.CompilerParams(
            dimension_semantics=("parallel", "parallel", "arbitrary"),
            vmem_limit_bytes=32 * 1024 * 1024),
    )(preds, tgt_enc)

    n_rows = b * (m - 1)                     # batchmean divisor (incl. padded rows,
    return jnp.sum(partials) / jnp.float32(n_rows)  # matching the PyTorch module)


def _reference_loss(preds, target, mask, voc_size, alpha=0.1):
    """Pure-JAX reference mirroring the PyTorch module exactly."""
    b, m, v = preds.shape
    mask_s = mask[:, :m][:, 1:]
    target_s = target[:, :m][:, 1:].reshape(-1)
    keep = (~mask_s).reshape(-1, 1).astype(jnp.float32)
    onehot = jax.nn.one_hot(target_s, voc_size, dtype=jnp.float32)
    t = (onehot * (1.0 - alpha) + alpha / voc_size) * keep
    p = preds[:, :-1, :].reshape(-1, v).astype(jnp.float32) * keep
    safe_t = jnp.where(t > 0, t, 1.0)
    elem = jnp.where(t > 0, t * (jnp.log(safe_t) - p), 0.0)
    return jnp.sum(elem) / (b * (m - 1))


def _make_case(key, b, m, v, dtype):
    k1, k2, k3 = jax.random.split(key, 3)
    # log-space predictions (KLDivLoss expects log-probabilities as input)
    preds = jax.nn.log_softmax(
        jax.random.normal(k1, (b, m, v), dtype=jnp.float32), axis=-1).astype(dtype)
    target = jax.random.randint(k2, (b, m), 0, v, dtype=jnp.int32)
    # padding mask: True wherever there's padding (positions >= length)
    lengths = jax.random.randint(k3, (b, 1), 3, m + 1, dtype=jnp.int32)
    mask = jnp.arange(m)[None, :] >= lengths
    return preds, target, mask


if __name__ == "__main__":
    key = jax.random.PRNGKey(0)
    k1, k2 = jax.random.split(key)
    alpha = 0.1

    # case 1: small f32, single vocab tile
    preds, target, mask = _make_case(k1, 2, 8, 32, jnp.float32)
    loss = jax.block_until_ready(
        loss_forward(preds, target, mask, voc_size=32, alpha=alpha))
    ref = _reference_loss(preds, target, mask, 32, alpha)
    assert jnp.allclose(loss, ref, atol=1e-4, rtol=1e-5), (loss, ref)

    # case 2: bf16 preds, vocab split across the inner "arbitrary" grid axis
    preds, target, mask = _make_case(k2, 1, 16, 1536, jnp.bfloat16)
    loss = jax.block_until_ready(
        loss_forward(preds, target, mask, voc_size=1536, alpha=alpha))
    ref = _reference_loss(preds, target, mask, 1536, alpha)
    assert jnp.allclose(loss, ref, atol=1e-3, rtol=1e-4), (loss, ref)

    print("KERNEL_OK")
</pallas_src>

<mosaic_0001>
module attributes {stable_mosaic.version = 11 : i64} {
  func.func @_kl_smooth_kernel(%arg0: i32, %arg1: i32, %arg2: i32, %arg3: memref<1x8x32xf32, #tpu.memory_space<vmem>>, %arg4: memref<1x8x1xi32, #tpu.memory_space<vmem>>, %arg5: memref<1x1x8x128xf32, #tpu.memory_space<vmem>>) attributes {dimension_semantics = [#tpu.dimension_semantics<parallel>, #tpu.dimension_semantics<parallel>, #tpu.dimension_semantics<arbitrary>], iteration_bounds = array<i64: 2, 1, 1>, scalar_prefetch = 0 : i64, scratch_operands = 0 : i64, tpu.core_type = #tpu.core_type<tc>, window_params = [{transform_indices = @transform_0, window_bounds = array<i64: 1, 8, 32>}, {transform_indices = @transform_1, window_bounds = array<i64: 1, 8, 1>}, {transform_indices = @transform_2, window_bounds = array<i64: 1, 1, 8, 128>}]} {
    %0 = tpu.iota {dimensions = array<i32: 1>} : vector<1x32xi32>
    %c0 = arith.constant 0 : index
    %c0_0 = arith.constant 0 : index
    %c0_1 = arith.constant 0 : index
    %1 = vector.load %arg3[%c0, %c0_0, %c0_1] : memref<1x8x32xf32, #tpu.memory_space<vmem>>, vector<1x8x32xf32>
    %2 = vector.shape_cast %1 : vector<1x8x32xf32> to vector<8x32xf32>
    %c0_2 = arith.constant 0 : index
    %c0_3 = arith.constant 0 : index
    %c0_4 = arith.constant 0 : index
    %3 = vector.load %arg4[%c0_2, %c0_3, %c0_4] : memref<1x8x1xi32, #tpu.memory_space<vmem>>, vector<1x8x1xi32>
    %4 = vector.shape_cast %3 : vector<1x8x1xi32> to vector<8x1xi32>
    %c0_i32 = arith.constant 0 : i32
    %5 = vector.broadcast %c0_i32 : i32 to vector<8x1xi32>
    %6 = arith.cmpi sge, %4, %5 : vector<8x1xi32>
    %7 = vector.broadcast %0 : vector<1x32xi32> to vector<8x32xi32>
    %8 = vector.broadcast %4 : vector<8x1xi32> to vector<8x32xi32>
    %9 = arith.cmpi eq, %7, %8 : vector<8x32xi32>
    %cst = arith.constant 0.903124988 : f32
    %cst_5 = arith.constant 3.125000e-03 : f32
    %10 = vector.broadcast %cst : f32 to vector<8x32xf32>
    %11 = vector.broadcast %cst_5 : f32 to vector<8x32xf32>
    %12 = arith.select %9, %10, %11 : vector<8x32xi1>, vector<8x32xf32>
    %13 = arith.mulf %2, %12 : vector<8x32xf32>
    %cst_6 = arith.constant dense<0.000000e+00> : vector<8xf32>
    %14 = vector.multi_reduction <add>, %13, %cst_6 [1] : vector<8x32xf32> to vector<8xf32>
    %15 = vector.shape_cast %14 : vector<8xf32> to vector<8x1xf32>
    %cst_7 = arith.constant 0.000000e+00 : f32
    %16 = vector.broadcast %cst_7 : f32 to vector<8x1xf32>
    %17 = arith.select %6, %15, %16 : vector<8x1xi1>, vector<8x1xf32>
    %18 = vector.shape_cast %17 : vector<8x1xf32> to vector<1x8x1xf32>
    %cst_8 = arith.constant dense<0.000000e+00> : vector<1xf32>
    %19 = vector.multi_reduction <add>, %18, %cst_8 [1, 2] : vector<1x8x1xf32> to vector<1xf32>
    %20 = vector.shape_cast %19 : vector<1xf32> to vector<1x1x1xf32>
    %21 = vector.extract %20[0, 0, 0] : f32 from vector<1x1x1xf32>
    %cst_9 = arith.constant 1.000000e+00 : f32
    %cst_10 = arith.constant 0.000000e+00 : f32
    %22 = vector.broadcast %cst_9 : f32 to vector<8x1xf32>
    %23 = vector.broadcast %cst_10 : f32 to vector<8x1xf32>
    %24 = arith.select %6, %22, %23 : vector<8x1xi1>, vector<8x1xf32>
    %25 = vector.shape_cast %24 : vector<8x1xf32> to vector<1x8x1xf32>
    %cst_11 = arith.constant dense<0.000000e+00> : vector<1xf32>
    %26 = vector.multi_reduction <add>, %25, %cst_11 [1, 2] : vector<1x8x1xf32> to vector<1xf32>
    %27 = vector.shape_cast %26 : vector<1xf32> to vector<1x1x1xf32>
    %28 = vector.extract %27[0, 0, 0] : f32 from vector<1x1x1xf32>
    %c0_i32_12 = arith.constant 0 : i32
    %29 = arith.cmpi eq, %arg2, %c0_i32_12 : i32
    %cst_13 = arith.constant -0.650829374 : f32
    %30 = arith.mulf %28, %cst_13 : f32
    %cst_14 = arith.constant 0.000000e+00 : f32
    %31 = arith.select %29, %30, %cst_14 : f32
    %32 = arith.subf %31, %21 : f32
    %c0_i32_15 = arith.constant 0 : i32
    %33 = arith.cmpi eq, %arg2, %c0_i32_15 : i32
    %34 = arith.extui %33 : i1 to i32
    %c0_i32_16 = arith.constant 0 : i32
    %35 = arith.cmpi ne, %34, %c0_i32_16 : i32
    scf.if %35 {
      %cst_28 = arith.constant 0.000000e+00 : f32
      %50 = vector.broadcast %cst_28 : f32 to vector<1x1x8x128xf32>
      %c0_29 = arith.constant 0 : index
      %c0_30 = arith.constant 0 : index
      %c0_31 = arith.constant 0 : index
      %c0_32 = arith.constant 0 : index
      %51 = vector.load %arg5[%c0_29, %c0_30, %c0_31, %c0_32] : memref<1x1x8x128xf32, #tpu.memory_space<vmem>>, vector<1x1x8x128xf32>
      tpu.vector_store %arg5[%c0_29, %c0_30, %c0_31, %c0_32], %50 {strides = array<i32>} : memref<1x1x8x128xf32, #tpu.memory_space<vmem>>, vector<1x1x8x128xf32>,
    } else {
    }
    %36 = tpu.iota {dimensions = array<i32: 0>} : vector<8x128xi32>
    %37 = tpu.iota {dimensions = array<i32: 1>} : vector<8x128xi32>
    %c0_i32_17 = arith.constant 0 : i32
    %38 = vector.broadcast %c0_i32_17 : i32 to vector<8x128xi32>
    %39 = arith.cmpi eq, %36, %38 : vector<8x128xi32>
    %c0_i32_18 = arith.constant 0 : i32
    %40 = vector.broadcast %c0_i32_18 : i32 to vector<8x128xi32>
    %41 = arith.cmpi eq, %37, %40 : vector<8x128xi32>
    %42 = arith.andi %39, %41 : vector<8x128xi1>
    %cst_19 = arith.constant 0.000000e+00 : f32
    %43 = vector.broadcast %32 : f32 to vector<8x128xf32>
    %44 = vector.broadcast %cst_19 : f32 to vector<8x128xf32>
    %45 = arith.select %42, %43, %44 : vector<8x128xi1>, vector<8x128xf32>
    %c0_20 = arith.constant 0 : index
    %c0_21 = arith.constant 0 : index
    %c0_22 = arith.constant 0 : index
    %c0_23 = arith.constant 0 : index
    %46 = vector.load %arg5[%c0_20, %c0_21, %c0_22, %c0_23] : memref<1x1x8x128xf32, #tpu.memory_space<vmem>>, vector<1x1x8x128xf32>
    %47 = vector.shape_cast %45 : vector<8x128xf32> to vector<1x1x8x128xf32>
    %48 = arith.addf %46, %47 : vector<1x1x8x128xf32>
    %c0_24 = arith.constant 0 : index
    %c0_25 = arith.constant 0 : index
    %c0_26 = arith.constant 0 : index
    %c0_27 = arith.constant 0 : index
    %49 = vector.load %arg5[%c0_24, %c0_25, %c0_26, %c0_27] : memref<1x1x8x128xf32, #tpu.memory_space<vmem>>, vector<1x1x8x128xf32>
    tpu.vector_store %arg5[%c0_24, %c0_25, %c0_26, %c0_27], %48 {strides = array<i32>} : memref<1x1x8x128xf32, #tpu.memory_space<vmem>>, vector<1x1x8x128xf32>,
    return
  }
  func.func @transform_0(%arg0: i32, %arg1: i32, %arg2: i32) -> (i32, i32, i32) {
    %c0_i32 = arith.constant 0 : i32
    return %arg0, %arg1, %arg2 : i32, i32, i32
  }
  func.func @transform_1(%arg0: i32, %arg1: i32, %arg2: i32) -> (i32, i32, i32) {
    %c0_i32 = arith.constant 0 : i32
    %c0_i32_0 = arith.constant 0 : i32
    return %arg0, %arg1, %c0_i32 : i32, i32, i32
  }
  func.func @transform_2(%arg0: i32, %arg1: i32, %arg2: i32) -> (i32, i32, i32, i32) {
    %c0_i32 = arith.constant 0 : i32
    %c0_i32_0 = arith.constant 0 : i32
    %c0_i32_1 = arith.constant 0 : i32
    return %arg0, %arg1, %c0_i32, %c0_i32_0 : i32, i32, i32, i32
  }
}

</mosaic_0001>

<bundles_post_ra>
// kernel: tpu_custom_call.1
= control target key start
LH: loop header
LB: loop body
LE: loop exit
PB: predicated region body
PF: predicated region fallthrough
CT: control target
= control target key end

     0   :  { %7 = vsyncpa [#allocation3], 0  ;;  %s648_s0 = inlined_call_operand.vmem [shape: f32[2,8,32], index: 0, kind: input, shape index: {}]   ;;  %s649_s1 = inlined_call_operand.vmem [shape: s32[2,8,1], index: 1, kind: input, shape index: {}]   ;;  %s650_s2 = inlined_call_operand.hbm [shape: f32[2,1,8,128], index: 2, kind: output, shape index: {}]  }
   0x1   :  { %9 = vsyncpa [#allocation3 + $0x1], 0  ;;  %s548_s9 = smov 0   ;;  %s550_s10 = smov 0  }
   0x2   :  { %s552_s11 = smov 0   ;;  %s554_s12 = smov 0  }
   0x3   :  { %s556_s13 = smov 0   ;;  %s558_s14 = smov 0  }
   0x4 LB: > { %s375_s15 = sadd.s32 4294967295, %s528_s14   ;;  %s376_s16 = sadd.s32 4294967294, %s528_s14   ;;  %s528_s14 = sphi %s558_s14, %s15_s14   ;;  %s524_s13 = sphi %s556_s13, %s657_s13   ;;  %s520_s12 = sphi %s554_s12, %s656_s12   ;;  %s516_s11 = sphi %s552_s11, %s655_s11   ;;  %s512_s10 = sphi %s550_s10, %s654_s10   ;;  %s508_s9 = sphi %s548_s9, %s653_s9  }
   0x5   : > { %s34_s17 = sadd.s32 1, %s524_s13  ;;  %s101_s18 = sadd.s32 1, %s516_s11 }
   0x6   : > { %p36_p0 = scmp.ge.s32.totalorder %s34_s17, 2  ;;  %p111_p1 = scmp.ne.s32.totalorder %s516_s11, %s512_s10 }
   0x7   : > { %p112_p2 = scmp.eq.s32.totalorder %s375_s15, 1  ;;  %p117_p3 = scmp.ne.s32.totalorder %s512_s10, %s508_s9 }
   0x8   : > { %s659_s17 = smov (%p36_p0, %s34_s17), 0  ;;  %p118_p5 = scmp.eq.s32.totalorder %s376_s16, 1 }
   0x9   : > { %p588_p4 = por %p112_p2, %p111_p1  ;;  %s96_s20 = ssub.s32 %s524_s13, %s659_s17 }
   0xa   : > { %p379_p6 = scmp.ge.s32.totalorder %s528_s14, 1  ;;  %p99_p7 = scmp.eq.s32.totalorder %s96_s20, 0 }
   0xb   : > { %p595_p8 = por %p118_p5, %p117_p3  ;;  %p159_p9 = scmp.lt.s32.totalorder %s528_s14, 3 }
   0xc   : > { %s601_s22 = scalar_select %p99_p7, %s516_s11, %s101_s18  }
   0xd   : > { %p160_p10 = pnand %p379_p6, %p159_p9 }
   0xe   : > { %p193_p11 = scmp.lt.s32.totalorder (!%p160_p10), %s520_s12, 1  ;;  %s190_s3 = sand.u32 (!%p160_p10), 1, %s512_s10  }
   0xf   : > { %163 = sbr.rel (%p160_p10) target bundleno = 458 (0x1ca), region = 28  ;;  %s380_s4 = sshll.u32 (!%p160_p10), %s190_s3, 3 }
  0x10   : > { %s384_s5 = sshll.u32 (!%p160_p10), %s520_s12, 3 }
  0x11   : > { %s278_s18 = scalar_lea.hbm (!%p160_p10), %s650_s2, %s384_s5 }
  0x12   : > { %s282_s25 = sshll.u32 (!%p160_p10), %s278_s18, 4  ;;  %s283_s25 = int_to_ptr.hbm [resolvable:$true] %s282_s25 }
  0x13   : > { %s464_s26 = sshra.s32 (!%p160_p10), %s283_s25, 4  ;;  %s465_s26 = int_to_ptr.hbm [resolvable:$true] %s464_s26 }
  0x14   : > { %v530_v0 = vmov 0   ;;  %s194_s23 = scalar_select %p193_p11, %s520_s12, 1  ;;  %v210_v2 = vlaneseq  ;;  %v531_v6 = vmov 0.003125   ;;  %vm221_vm1 = vcmask 261120  }
  0x15   : > { %449 = vset.pattern.permute.xlu0 %v530_v0  ;;  %vm226_vm3 = vcmask 7168   ;;  %v532_v13 = vmov 0.0   ;;  %s267_s12 = scalar_lea.sflag [#allocation3], %s190_s3  ;;  %p471_p1 = scmp.lt.s32.totalorder %s465_s26, %s650_s2 }
  0x16   : > { %s381_s24 = sshll.u32 %s194_s23, 3  ;;  %v211_v3 = vand.u32 127, %v210_v2  ;;  %v257_v30 = vshrl.u32 %v210_v2, 7  ;;  %s192_s23 = scalar_lea.vmem [#allocation2], %s380_s4 }
  0x17   : > { %s209_s27 = scalar_lea.vmem %s649_s1, %s381_s24  ;;  %s202_s30 = scalar_lea.vmem %s648_s0, %s381_s24 }
  0x18   : > { %v213_v1 = vld [vmem:[%s209_s27] sm:$0xff]  ;;  %vm259_vm4 = vcmp.eq.s32.totalorder %v211_v3, 0  ;;  %vm258_vm5 = vcmp.eq.s32.totalorder %v257_v30, 0  ;;  %s280_s24 = sshll.u32 %s192_s23, 4  ;;  %s466_s27 = scalar_lea.hbm %s465_s26, 8  ;;  %s281_s24 = int_to_ptr.vmem [resolvable:$true] %s280_s24 }
  0x19   : > { %216 = vperm.xlu0 %449, %v213_v1   ;;  %v212_v4 = vld [vmem:[%s202_s30] sm:$0xff]  ;;  %vm214_vm2 = vcmp.ge.s32.totalorder %v213_v1, 0  ;;  %vm260_vm6 = vmand %vm258_vm5, %vm259_vm4  ;;  %p467_p12 = scmp.ne.s32.totalorder %s465_s26, %s466_s27  ;;  %s470_s30 = scalar_lea.hbm %s650_s2, 16 }
  0x1a   : > { %v237_v14 = vsel %vm214_vm2, 1.0, %v532_v13  ;;  %p472_p2 = scmp.lt.s32.totalorder %s470_s30, %s466_s27 }
  0x1b   : > { %v238_v15 = vsel %vm226_vm3, %v237_v14, 0.0  ;;  %p468_p13 = pnand %p467_p12, %p588_p4 }
  0x1c   : > { %p473_p3 = por %p472_p2, %p471_p1 }
  0x1d   : > { %p469_p0 = pneg %p468_p13 }
  0x1f   : > { %p474_p5 = pnand %p473_p3, %p469_p0 }
  0x8b   : > { %v217_v5 = vpop.permute.xlu0 %216 }
  0x8c   : > { %vm218_vm0 = vcmp.eq.s32.totalorder %v211_v3, %v217_v5 }
  0x8d   : > { %v219_v7 = vsel %vm218_vm0, 0.903125, %v531_v6 }
  0x8e   : > { %v220_v8 = vmul.f32 %v219_v7, %v212_v4 }
  0x90   : > { %v222_v9 = vsel %vm221_vm1, %v220_v8, 0.0 }
  0x91   : > { %223 = vadd.xlane.f32.xlu0 %v222_v9 }
 0x104   : > { %v224_v10 = vpop.xlane.xlu0 %223 }
 0x105   : > { %v225_v11 = vsel %vm214_vm2, %v224_v10, 0.0 }
 0x106   : > { %v227_v12 = vsel %vm226_vm3, %v225_v11, 0.0 }
 0x107   : > { %228 = vadd.xlane.f32.xlu1 %v227_v12 }
 0x10f   : > { %239 = vadd.xlane.f32.xlu1 %v238_v15 }
 0x17a   : > { %v229_v16 = vpop.xlane.xlu1 %228 }
 0x17b   : > { %v230_v17 = vrot.slane %v229_v16, 4 }
 0x17d   : > { %v231_v18 = vadd.f32 %v230_v17, %v229_v16 }
 0x17f   : > { %v232_v19 = vrot.slane %v231_v18, 2 }
 0x181   : > { %v233_v20 = vadd.f32 %v232_v19, %v231_v18 }
 0x182   : > { %v240_v21 = vpop.xlane.xlu1 %239 }
 0x183   : > { %v241_v22 = vrot.slane %v240_v21, 4  ;;  %v234_v23 = vrot.slane %v233_v20, 1 }
 0x185   : > { %v242_v24 = vadd.f32 %v241_v22, %v240_v21  ;;  %v235_v25 = vadd.f32 %v234_v23, %v233_v20 }
 0x187   : > { %v243_v26 = vrot.slane %v242_v24, 2  ;;  %387 = vpush %v235_v25 }
 0x189   : > { %v244_v27 = vadd.f32 %v243_v26, %v242_v24 }
 0x18b   : > { %v245_v28 = vrot.slane %v244_v27, 1 }
 0x18d   : > { %v246_v29 = vadd.f32 %v245_v28, %v244_v27 }
 0x18f   : > { %389 = vpush %v246_v29 }
 0x1b8   : > { %s388_s6 = spop %387 }
 0x1c0   : > { %s390_s7 = spop %389 }
 0x1c1   : > { %s249_s8 = smul.f32 -0.6508294, %s390_s7 }
 0x1c3   : > { %s251_s20 = ssub.f32 %s249_s8, %s388_s6 }
 0x1c5   : > { %v261_v31 = vstv %s251_s20 }
 0x1c6   : > { %v262_v32 = vsel %vm260_vm6, %v261_v31, 0.0 }
 0x1c7   : > { %265 = vst [vmem:[%s192_s23] sm:$0xff] %v262_v32 }
 0x1c8   : > { %477 = shalt.err (!%p474_p5)
}
 0x1c9   : > { %391 = dma.vmem_to_hbm [thread:$0]  (%p588_p4), %s281_s24, 128, %s283_s25, %s267_s12  }
 0x1ca PF: > { %p397_p6 = scmp.ge.s32.totalorder %s528_s14, 2  ;;  %s294_s3 = sand.u32 1, %s508_s9  }
 0x1cb   : > { %s295_s6 = scalar_lea.sflag [#allocation3], %s294_s3 }
 0x1cc   : > { %p394_p7 = pnand %p397_p6, %p595_p8 }
 0x1ce   : > { %p395_p9 = pneg %p394_p7 }
 0x1d0   : > { %503 = dma.done.wait (%p395_p9), %s295_s6, 128  }
 0x1d1   : > { %505 = vsyncadd (%p395_p9), %s295_s6, 4294967168  ;;  %s15_s14 = sadd.s32 1, %s528_s14   ;;  %s653_s9 = smov %s512_s10 }
 0x1d2   : > { %p12_p10 = scmp.ge.s32.totalorder %s15_s14, 4   ;;  %s654_s10 = smov %s516_s11 }
 0x1d3   : > { %s655_s11 = smov %s601_s22  ;;  %s656_s12 = smov %s524_s13 }
 0x1d4   : > { %s657_s13 = smov %s659_s17  ;;  %14 = sbr.rel (!%p12_p10) target bundleno = 4 (0x4), region = 70 }
 0x1d9   :  { %301 = vsyncpa [#allocation3], 1 }
 0x1da   :  { %303 = vsyncpa [#allocation3 + $0x1], 1 }

</bundles_post_ra>
